<compile_context>
chip_gen: v7x
topology: tpu7x:2x2x1
jax: 0.10.0
libtpu: 0.0.40
codegen_flags: <defaults>
</compile_context>

<pallas_src>
import functools

import jax
import jax.numpy as jnp
from jax import lax
from jax.experimental import pallas as pl
from jax.experimental.pallas import tpu as pltpu


def _triplet_kernel(x_blk_ref, x_all_ref, sq_col_ref, sq_row_ref,
                    lab_col_ref, lab_row_ref, lf_blk_ref, lf_all_ref,
                    gl_ref, ll_ref, *, margin, n_real, tm, n_pad):
    f32 = jnp.float32
    x_blk = x_blk_ref[...]            # (TM, Dp)   anchor rows of this block
    x_all = x_all_ref[...]            # (Np, Dp)   all (padded) samples
    lf_blk = lf_blk_ref[...]          # (TM, Dlp)
    lf_all = lf_all_ref[...]          # (Np, Dlp)
    sq_blk = sq_col_ref[...]          # (TM, 1)    |x_i|^2 for block rows
    sq_row = sq_row_ref[...]          # (1, Np)    |x_j|^2 for all columns
    lab_blk = lab_col_ref[...]        # (TM, 1)    int32
    lab_row = lab_row_ref[...]        # (1, Np)    int32

    # --- pairwise SQUARED distances (clamped); sqrt deferred to selections ---
    gram = lax.dot_general(x_blk, x_all, (((1,), (1,)), ((), ())),
                           preferred_element_type=f32)            # (TM, Np)
    dist2 = jnp.maximum(sq_blk + sq_row - 2.0 * gram, 1e-12)       # (TM, Np)

    # --- hard example mining (first-index tie-break, like the reference) -----
    col = lax.broadcasted_iota(jnp.int32, (tm, n_pad), 1)           # reused
    row = lax.broadcasted_iota(jnp.int32, (tm, 1), 0)
    is_pos = lab_blk == lab_row                                     # (TM, Np)
    valid_col = col < n_real                                        # pad cols

    NEG = f32(-3.0e38)
    POS = f32(3.0e38)

    # hardest positive: max over same-label columns (diag included, as torch)
    pos_key = jnp.where(is_pos, dist2, NEG)
    best_p = jnp.max(pos_key, axis=1, keepdims=True)                # (TM, 1)
    p_ind = jnp.min(jnp.where(pos_key >= best_p, col, n_pad),
                    axis=1, keepdims=True)                          # (TM, 1)

    # hardest negative: min over different-label REAL columns
    neg_key = jnp.where((~is_pos) & valid_col, dist2, POS)
    best_n = jnp.min(neg_key, axis=1, keepdims=True)                # (TM, 1)
    n_ind = jnp.min(jnp.where(neg_key <= best_n, col, n_pad),
                    axis=1, keepdims=True)                          # (TM, 1)

    dist_ap = jnp.sqrt(best_p)                                      # (TM, 1)
    dist_an = jnp.sqrt(best_n)

    # --- gather hard local features via one-hot MXU matmuls ------------------
    onehot_p = (col == p_ind).astype(f32)                           # (TM, Np)
    onehot_n = (col == n_ind).astype(f32)
    lf_p = jnp.dot(onehot_p, lf_all, preferred_element_type=f32)    # (TM, Dlp)
    lf_n = jnp.dot(onehot_n, lf_all, preferred_element_type=f32)
    dfp = lf_blk - lf_p
    dfn = lf_blk - lf_n
    local_ap = jnp.sqrt(jnp.sum(dfp * dfp, axis=1, keepdims=True))  # (TM, 1)
    local_an = jnp.sqrt(jnp.sum(dfn * dfn, axis=1, keepdims=True))

    # --- MarginRankingLoss (y = 1, mean over the real rows only) -------------
    m = f32(margin)
    inv_n = f32(1.0 / n_real)
    valid_row = (pl.program_id(0) * tm + row) < n_real              # (TM, 1)
    g_h = jnp.where(valid_row, jnp.maximum(m - (dist_an - dist_ap), 0.0), 0.0)
    l_h = jnp.where(valid_row, jnp.maximum(m - (local_an - local_ap), 0.0), 0.0)
    g_part = jnp.sum(g_h, axis=0, keepdims=True) * inv_n            # (1, 1)
    l_part = jnp.sum(l_h, axis=0, keepdims=True) * inv_n

    # lane-dense (8,128) output tiles (value broadcast across the tile)
    gl_ref[...] = jnp.zeros((8, 128), f32) + g_part
    ll_ref[...] = jnp.zeros((8, 128), f32) + l_part


def _round_up(x, m):
    return (x + m - 1) // m * m


def triplet_hard_loss_aligned_reid(inputs, targets, local_features,
                                   margin=0.3, max_block_rows=256):
    """Returns (global_loss, local_loss), matching the PyTorch module."""
    n, d = inputs.shape
    dl = local_features.shape[1]

    x = inputs.astype(jnp.float32)
    lf = local_features.astype(jnp.float32)
    labels = targets.astype(jnp.int32)

    # lane-dense feature widths, 8-aligned batch, row-block tiling
    max_block_rows = max(8, (int(max_block_rows) // 8) * 8)
    dp = _round_up(d, 128)
    dlp = _round_up(dl, 128)
    n8 = _round_up(n, 8)
    g = -(-n8 // max_block_rows)                 # number of row blocks
    tm = _round_up(-(-n8 // g), 8)               # rows per block (multiple of 8)
    n_pad = tm * g

    # zero-pad features (does not change norms/gram); pad rows get unique
    # labels so they are never positives of real rows.
    x = jnp.pad(x, ((0, n_pad - n), (0, dp - d)))
    lf = jnp.pad(lf, ((0, n_pad - n), (0, dlp - dl)))
    if n_pad > n:
        pad_lab = jnp.max(labels) + 1 + jnp.arange(n_pad - n, dtype=jnp.int32)
        labels = jnp.concatenate([labels, pad_lab])

    # squared norms computed once; passed as both views (layout plumbing only,
    # avoids an in-kernel (N,D) transpose / degenerate M=1 matmul).
    sq = jnp.sum(x * x, axis=1)
    sq_col = sq.reshape(n_pad, 1)
    sq_row = sq.reshape(1, n_pad)
    lab_col = labels.reshape(n_pad, 1)
    lab_row = labels.reshape(1, n_pad)

    # VMEM limit: ~10 live (TM,Np) temporaries + double-buffered inputs,
    # clamped to ~80% of this generation's physical VMEM.
    live = 4 * (10 * tm * n_pad
                + 2 * (n_pad * (dp + dlp) + tm * (dp + dlp)))
    vmem_cap = 64 << 20
    try:
        vmem_cap = int(pltpu.get_tpu_info().vmem_capacity_bytes)
    except Exception:
        pass
    vmem_bytes = int(min(max(live + (4 << 20), 16 << 20),
                         int(vmem_cap * 0.8)))

    cost = pl.CostEstimate(
        flops=2 * n_pad * n_pad * (dp + 2 * dlp) + 30 * n_pad * n_pad,
        transcendentals=4 * n_pad,
        bytes_accessed=4 * (g + 1) * n_pad * (dp + dlp) + 4 * g * 2 * 8 * 128,
    )

    kernel = functools.partial(_triplet_kernel, margin=margin, n_real=n,
                               tm=tm, n_pad=n_pad)

    out_g, out_l = pl.pallas_call(
        kernel,
        out_shape=(jax.ShapeDtypeStruct((g * 8, 128), jnp.float32),
                   jax.ShapeDtypeStruct((g * 8, 128), jnp.float32)),
        grid=(g,),
        in_specs=[
            pl.BlockSpec((tm, dp), lambda i: (i, 0)),        # x: anchor rows
            pl.BlockSpec((n_pad, dp), lambda i: (0, 0)),     # x: all columns
            pl.BlockSpec((tm, 1), lambda i: (i, 0)),         # |x|^2 column view
            pl.BlockSpec((1, n_pad), lambda i: (0, 0)),      # |x|^2 row view
            pl.BlockSpec((tm, 1), lambda i: (i, 0)),         # labels column view
            pl.BlockSpec((1, n_pad), lambda i: (0, 0)),      # labels row view
            pl.BlockSpec((tm, dlp), lambda i: (i, 0)),       # local feats (rows)
            pl.BlockSpec((n_pad, dlp), lambda i: (0, 0)),    # local feats (all)
        ],
        out_specs=(pl.BlockSpec((8, 128), lambda i: (i, 0)),
                   pl.BlockSpec((8, 128), lambda i: (i, 0))),
        compiler_params=pltpu.CompilerParams(
            dimension_semantics=("parallel",),
            vmem_limit_bytes=vmem_bytes),
        cost_estimate=cost,
    )(x, x, sq_col, sq_row, lab_col, lab_row, lf, lf)

    global_loss = jnp.sum(out_g[0::8, 0])
    local_loss = jnp.sum(out_l[0::8, 0])
    return global_loss, local_loss


def _reference(inputs, targets, local_features, margin=0.3):
    """Pure-JAX mirror of the PyTorch forward, for correctness checking."""
    sq = jnp.sum(inputs ** 2, axis=1, keepdims=True)
    dist = sq + sq.T - 2.0 * inputs @ inputs.T
    dist = jnp.sqrt(jnp.maximum(dist, 1e-12))
    is_pos = targets[:, None] == targets[None, :]
    is_neg = ~is_pos
    dist_ap = jnp.max(jnp.where(is_pos, dist, -jnp.inf), axis=1)
    dist_an = jnp.min(jnp.where(is_neg, dist, jnp.inf), axis=1)
    p_inds = jnp.argmax(jnp.where(is_pos, dist, -jnp.inf), axis=1)
    n_inds = jnp.argmin(jnp.where(is_neg, dist, jnp.inf), axis=1)
    lfp = local_features[p_inds]
    lfn = local_features[n_inds]
    ldap = jnp.sqrt(jnp.sum((local_features - lfp) ** 2, axis=1))
    ldan = jnp.sqrt(jnp.sum((local_features - lfn) ** 2, axis=1))
    gl = jnp.mean(jnp.maximum(margin - (dist_an - dist_ap), 0.0))
    ll = jnp.mean(jnp.maximum(margin - (ldan - ldap), 0.0))
    return gl, ll


if __name__ == "__main__":
    key = jax.random.PRNGKey(0)
    k1, k2 = jax.random.split(key)
    N, D, DL = 14, 32, 48                  # batch (not 8-aligned), feat dims
    inputs = jax.random.normal(k1, (N, D), jnp.float32)
    local_features = jax.random.normal(k2, (N, DL), jnp.float32)
    targets = jnp.array([0, 0, 1, 1, 2, 2, 3, 3, 4, 4, 5, 5, 6, 6], jnp.int32)

    # single row block (G=1) and multi-block "parallel" grid (G=2)
    gl1, ll1 = triplet_hard_loss_aligned_reid(
        inputs, targets, local_features, margin=0.3)
    gl2, ll2 = triplet_hard_loss_aligned_reid(
        inputs, targets, local_features, margin=0.3, max_block_rows=8)
    gl1, ll1, gl2, ll2 = jax.block_until_ready((gl1, ll1, gl2, ll2))

    ref_gl, ref_ll = _reference(inputs, targets, local_features, margin=0.3)
    for got, ref in ((gl1, ref_gl), (ll1, ref_ll), (gl2, ref_gl), (ll2, ref_ll)):
        assert jnp.allclose(got, ref, atol=1e-4, rtol=1e-5), (got, ref)

    print("KERNEL_OK")
</pallas_src>

<mosaic_0001>
module attributes {stable_mosaic.version = 11 : i64} {
  func.func @_triplet_kernel(%arg0: i32, %arg1: memref<16x128xf32, #tpu.memory_space<vmem>>, %arg2: memref<16x128xf32, #tpu.memory_space<vmem>>, %arg3: memref<16x1xf32, #tpu.memory_space<vmem>>, %arg4: memref<1x16xf32, #tpu.memory_space<vmem>>, %arg5: memref<16x1xi32, #tpu.memory_space<vmem>>, %arg6: memref<1x16xi32, #tpu.memory_space<vmem>>, %arg7: memref<16x128xf32, #tpu.memory_space<vmem>>, %arg8: memref<16x128xf32, #tpu.memory_space<vmem>>, %arg9: memref<8x128xf32, #tpu.memory_space<vmem>>, %arg10: memref<8x128xf32, #tpu.memory_space<vmem>>) attributes {dimension_semantics = [#tpu.dimension_semantics<parallel>], iteration_bounds = array<i64: 1>, scalar_prefetch = 0 : i64, scratch_operands = 0 : i64, tpu.core_type = #tpu.core_type<tc>, window_params = [{transform_indices = @transform_0, window_bounds = array<i64: 16, 128>}, {pipeline_mode = #tpu.pipeline_mode<synchronous>, transform_indices = @transform_1, window_bounds = array<i64: 16, 128>}, {transform_indices = @transform_2, window_bounds = array<i64: 16, 1>}, {pipeline_mode = #tpu.pipeline_mode<synchronous>, transform_indices = @transform_3, window_bounds = array<i64: 1, 16>}, {transform_indices = @transform_4, window_bounds = array<i64: 16, 1>}, {pipeline_mode = #tpu.pipeline_mode<synchronous>, transform_indices = @transform_5, window_bounds = array<i64: 1, 16>}, {transform_indices = @transform_6, window_bounds = array<i64: 16, 128>}, {pipeline_mode = #tpu.pipeline_mode<synchronous>, transform_indices = @transform_7, window_bounds = array<i64: 16, 128>}, {transform_indices = @transform_8, window_bounds = array<i64: 8, 128>}, {transform_indices = @transform_9, window_bounds = array<i64: 8, 128>}]} {
    %c0 = arith.constant 0 : index
    %c0_0 = arith.constant 0 : index
    %0 = vector.load %arg1[%c0, %c0_0] : memref<16x128xf32, #tpu.memory_space<vmem>>, vector<16x128xf32>
    %c0_1 = arith.constant 0 : index
    %c0_2 = arith.constant 0 : index
    %1 = vector.load %arg2[%c0_1, %c0_2] : memref<16x128xf32, #tpu.memory_space<vmem>>, vector<16x128xf32>
    %c0_3 = arith.constant 0 : index
    %c0_4 = arith.constant 0 : index
    %2 = vector.load %arg7[%c0_3, %c0_4] : memref<16x128xf32, #tpu.memory_space<vmem>>, vector<16x128xf32>
    %c0_5 = arith.constant 0 : index
    %c0_6 = arith.constant 0 : index
    %3 = vector.load %arg8[%c0_5, %c0_6] : memref<16x128xf32, #tpu.memory_space<vmem>>, vector<16x128xf32>
    %c0_7 = arith.constant 0 : index
    %c0_8 = arith.constant 0 : index
    %4 = vector.load %arg3[%c0_7, %c0_8] : memref<16x1xf32, #tpu.memory_space<vmem>>, vector<16x1xf32>
    %c0_9 = arith.constant 0 : index
    %c0_10 = arith.constant 0 : index
    %5 = vector.load %arg4[%c0_9, %c0_10] : memref<1x16xf32, #tpu.memory_space<vmem>>, vector<1x16xf32>
    %c0_11 = arith.constant 0 : index
    %c0_12 = arith.constant 0 : index
    %6 = vector.load %arg5[%c0_11, %c0_12] : memref<16x1xi32, #tpu.memory_space<vmem>>, vector<16x1xi32>
    %c0_13 = arith.constant 0 : index
    %c0_14 = arith.constant 0 : index
    %7 = vector.load %arg6[%c0_13, %c0_14] : memref<1x16xi32, #tpu.memory_space<vmem>>, vector<1x16xi32>
    %cst = arith.constant dense<0.000000e+00> : vector<16x16xf32>
    %8 = tpu.matmul %0, %1, %cst {dimension_numbers = #tpu.dot_dimension_numbers<[1], [1], [0], [0], [0, 0, 1, 0], [], []>} : vector<16x128xf32>, vector<16x128xf32>, vector<16x16xf32> -> vector<16x16xf32>
    %9 = vector.broadcast %4 : vector<16x1xf32> to vector<16x16xf32>
    %10 = vector.broadcast %5 : vector<1x16xf32> to vector<16x16xf32>
    %11 = arith.addf %9, %10 : vector<16x16xf32>
    %cst_15 = arith.constant 2.000000e+00 : f32
    %12 = vector.broadcast %cst_15 : f32 to vector<16x16xf32>
    %13 = arith.mulf %12, %8 : vector<16x16xf32>
    %14 = arith.subf %11, %13 : vector<16x16xf32>
    %cst_16 = arith.constant 9.99999996E-13 : f32
    %15 = vector.broadcast %cst_16 : f32 to vector<16x16xf32>
    %16 = arith.maximumf %14, %15 : vector<16x16xf32>
    %17 = tpu.iota {dimensions = array<i32: 1>} : vector<16x16xi32>
    %18 = tpu.iota {dimensions = array<i32: 0>} : vector<16x1xi32>
    %19 = vector.broadcast %6 : vector<16x1xi32> to vector<16x16xi32>
    %20 = vector.broadcast %7 : vector<1x16xi32> to vector<16x16xi32>
    %21 = arith.cmpi eq, %19, %20 : vector<16x16xi32>
    %c14_i32 = arith.constant 14 : i32
    %22 = vector.broadcast %c14_i32 : i32 to vector<16x16xi32>
    %23 = arith.cmpi slt, %17, %22 : vector<16x16xi32>
    %cst_17 = arith.constant -3.000000e+38 : f32
    %24 = vector.broadcast %cst_17 : f32 to vector<16x16xf32>
    %25 = arith.select %21, %16, %24 : vector<16x16xi1>, vector<16x16xf32>
    %cst_18 = arith.constant dense<0xFF800000> : vector<16xf32>
    %26 = vector.multi_reduction <maximumf>, %25, %cst_18 [1] : vector<16x16xf32> to vector<16xf32>
    %27 = vector.shape_cast %26 : vector<16xf32> to vector<16x1xf32>
    %28 = vector.broadcast %27 : vector<16x1xf32> to vector<16x16xf32>
    %29 = arith.cmpf oge, %25, %28 : vector<16x16xf32>
    %c16_i32 = arith.constant 16 : i32
    %30 = vector.broadcast %c16_i32 : i32 to vector<16x16xi32>
    %31 = arith.select %29, %17, %30 : vector<16x16xi1>, vector<16x16xi32>
    %cst_19 = arith.constant dense<2147483647> : vector<16xi32>
    %32 = vector.multi_reduction <minsi>, %31, %cst_19 [1] : vector<16x16xi32> to vector<16xi32>
    %33 = vector.shape_cast %32 : vector<16xi32> to vector<16x1xi32>
    %cst_20 = arith.constant dense<true> : vector<16x16xi1>
    %34 = arith.xori %21, %cst_20 : vector<16x16xi1>
    %35 = arith.andi %34, %23 : vector<16x16xi1>
    %cst_21 = arith.constant 3.000000e+38 : f32
    %36 = vector.broadcast %cst_21 : f32 to vector<16x16xf32>
    %37 = arith.select %35, %16, %36 : vector<16x16xi1>, vector<16x16xf32>
    %cst_22 = arith.constant dense<0x7F800000> : vector<16xf32>
    %38 = vector.multi_reduction <minimumf>, %37, %cst_22 [1] : vector<16x16xf32> to vector<16xf32>
    %39 = vector.shape_cast %38 : vector<16xf32> to vector<16x1xf32>
    %40 = vector.broadcast %39 : vector<16x1xf32> to vector<16x16xf32>
    %41 = arith.cmpf ole, %37, %40 : vector<16x16xf32>
    %c16_i32_23 = arith.constant 16 : i32
    %42 = vector.broadcast %c16_i32_23 : i32 to vector<16x16xi32>
    %43 = arith.select %41, %17, %42 : vector<16x16xi1>, vector<16x16xi32>
    %cst_24 = arith.constant dense<2147483647> : vector<16xi32>
    %44 = vector.multi_reduction <minsi>, %43, %cst_24 [1] : vector<16x16xi32> to vector<16xi32>
    %45 = vector.shape_cast %44 : vector<16xi32> to vector<16x1xi32>
    %46 = math.sqrt %27 : vector<16x1xf32>
    %47 = math.sqrt %39 : vector<16x1xf32>
    %48 = vector.broadcast %33 : vector<16x1xi32> to vector<16x16xi32>
    %49 = arith.cmpi eq, %17, %48 : vector<16x16xi32>
    %50 = arith.extui %49 : vector<16x16xi1> to vector<16x16xi32>
    %51 = arith.sitofp %50 : vector<16x16xi32> to vector<16x16xf32>
    %52 = vector.broadcast %45 : vector<16x1xi32> to vector<16x16xi32>
    %53 = arith.cmpi eq, %17, %52 : vector<16x16xi32>
    %54 = arith.extui %53 : vector<16x16xi1> to vector<16x16xi32>
    %55 = arith.sitofp %54 : vector<16x16xi32> to vector<16x16xf32>
    %cst_25 = arith.constant dense<0.000000e+00> : vector<16x128xf32>
    %56 = tpu.matmul %51, %3, %cst_25 {dimension_numbers = #tpu.dot_dimension_numbers<[1], [0], [0], [1], [0, 0, 1, 1], [], []>} : vector<16x16xf32>, vector<16x128xf32>, vector<16x128xf32> -> vector<16x128xf32>
    %cst_26 = arith.constant dense<0.000000e+00> : vector<16x128xf32>
    %57 = tpu.matmul %55, %3, %cst_26 {dimension_numbers = #tpu.dot_dimension_numbers<[1], [0], [0], [1], [0, 0, 1, 1], [], []>} : vector<16x16xf32>, vector<16x128xf32>, vector<16x128xf32> -> vector<16x128xf32>
    %58 = arith.subf %2, %56 : vector<16x128xf32>
    %59 = arith.subf %2, %57 : vector<16x128xf32>
    %60 = arith.mulf %58, %58 : vector<16x128xf32>
    %cst_27 = arith.constant dense<0.000000e+00> : vector<16xf32>
    %61 = vector.multi_reduction <add>, %60, %cst_27 [1] : vector<16x128xf32> to vector<16xf32>
    %62 = vector.shape_cast %61 : vector<16xf32> to vector<16x1xf32>
    %63 = math.sqrt %62 : vector<16x1xf32>
    %64 = arith.mulf %59, %59 : vector<16x128xf32>
    %cst_28 = arith.constant dense<0.000000e+00> : vector<16xf32>
    %65 = vector.multi_reduction <add>, %64, %cst_28 [1] : vector<16x128xf32> to vector<16xf32>
    %66 = vector.shape_cast %65 : vector<16xf32> to vector<16x1xf32>
    %67 = math.sqrt %66 : vector<16x1xf32>
    %c16_i32_29 = arith.constant 16 : i32
    %68 = arith.muli %arg0, %c16_i32_29 : i32
    %69 = vector.broadcast %68 : i32 to vector<16x1xi32>
    %70 = arith.addi %69, %18 : vector<16x1xi32>
    %c14_i32_30 = arith.constant 14 : i32
    %71 = vector.broadcast %c14_i32_30 : i32 to vector<16x1xi32>
    %72 = arith.cmpi slt, %70, %71 : vector<16x1xi32>
    %73 = arith.subf %47, %46 : vector<16x1xf32>
    %cst_31 = arith.constant 3.000000e-01 : f32
    %74 = vector.broadcast %cst_31 : f32 to vector<16x1xf32>
    %75 = arith.subf %74, %73 : vector<16x1xf32>
    %cst_32 = arith.constant 0.000000e+00 : f32
    %76 = vector.broadcast %cst_32 : f32 to vector<16x1xf32>
    %77 = arith.maximumf %75, %76 : vector<16x1xf32>
    %cst_33 = arith.constant 0.000000e+00 : f32
    %78 = vector.broadcast %cst_33 : f32 to vector<16x1xf32>
    %79 = arith.select %72, %77, %78 : vector<16x1xi1>, vector<16x1xf32>
    %80 = arith.subf %67, %63 : vector<16x1xf32>
    %cst_34 = arith.constant 3.000000e-01 : f32
    %81 = vector.broadcast %cst_34 : f32 to vector<16x1xf32>
    %82 = arith.subf %81, %80 : vector<16x1xf32>
    %cst_35 = arith.constant 0.000000e+00 : f32
    %83 = vector.broadcast %cst_35 : f32 to vector<16x1xf32>
    %84 = arith.maximumf %82, %83 : vector<16x1xf32>
    %cst_36 = arith.constant 0.000000e+00 : f32
    %85 = vector.broadcast %cst_36 : f32 to vector<16x1xf32>
    %86 = arith.select %72, %84, %85 : vector<16x1xi1>, vector<16x1xf32>
    %cst_37 = arith.constant dense<0.000000e+00> : vector<1xf32>
    %87 = vector.multi_reduction <add>, %79, %cst_37 [0] : vector<16x1xf32> to vector<1xf32>
    %88 = vector.shape_cast %87 : vector<1xf32> to vector<1x1xf32>
    %cst_38 = arith.constant 0.0714285746 : f32
    %89 = vector.broadcast %cst_38 : f32 to vector<1x1xf32>
    %90 = arith.mulf %88, %89 : vector<1x1xf32>
    %cst_39 = arith.constant dense<0.000000e+00> : vector<1xf32>
    %91 = vector.multi_reduction <add>, %86, %cst_39 [0] : vector<16x1xf32> to vector<1xf32>
    %92 = vector.shape_cast %91 : vector<1xf32> to vector<1x1xf32>
    %cst_40 = arith.constant 0.0714285746 : f32
    %93 = vector.broadcast %cst_40 : f32 to vector<1x1xf32>
    %94 = arith.mulf %92, %93 : vector<1x1xf32>
    %cst_41 = arith.constant 0.000000e+00 : f32
    %95 = vector.broadcast %cst_41 : f32 to vector<8x128xf32>
    %96 = vector.broadcast %90 : vector<1x1xf32> to vector<8x128xf32>
    %97 = arith.addf %95, %96 : vector<8x128xf32>
    %c0_42 = arith.constant 0 : index
    %c0_43 = arith.constant 0 : index
    %98 = vector.load %arg9[%c0_42, %c0_43] : memref<8x128xf32, #tpu.memory_space<vmem>>, vector<8x128xf32>
    tpu.vector_store %arg9[%c0_42, %c0_43], %97 {strides = array<i32>} : memref<8x128xf32, #tpu.memory_space<vmem>>, vector<8x128xf32>,
    %cst_44 = arith.constant 0.000000e+00 : f32
    %99 = vector.broadcast %cst_44 : f32 to vector<8x128xf32>
    %100 = vector.broadcast %94 : vector<1x1xf32> to vector<8x128xf32>
    %101 = arith.addf %99, %100 : vector<8x128xf32>
    %c0_45 = arith.constant 0 : index
    %c0_46 = arith.constant 0 : index
    %102 = vector.load %arg10[%c0_45, %c0_46] : memref<8x128xf32, #tpu.memory_space<vmem>>, vector<8x128xf32>
    tpu.vector_store %arg10[%c0_45, %c0_46], %101 {strides = array<i32>} : memref<8x128xf32, #tpu.memory_space<vmem>>, vector<8x128xf32>,
    return
  }
  func.func @transform_0(%arg0: i32) -> (i32, i32) {
    %c0_i32 = arith.constant 0 : i32
    %c0_i32_0 = arith.constant 0 : i32
    return %arg0, %c0_i32 : i32, i32
  }
  func.func @transform_1(%arg0: i32) -> (i32, i32) {
    %c0_i32 = arith.constant 0 : i32
    %c0_i32_0 = arith.constant 0 : i32
    %c0_i32_1 = arith.constant 0 : i32
    return %c0_i32, %c0_i32_0 : i32, i32
  }
  func.func @transform_2(%arg0: i32) -> (i32, i32) {
    %c0_i32 = arith.constant 0 : i32
    %c0_i32_0 = arith.constant 0 : i32
    return %arg0, %c0_i32 : i32, i32
  }
  func.func @transform_3(%arg0: i32) -> (i32, i32) {
    %c0_i32 = arith.constant 0 : i32
    %c0_i32_0 = arith.constant 0 : i32
    %c0_i32_1 = arith.constant 0 : i32
    return %c0_i32, %c0_i32_0 : i32, i32
  }
  func.func @transform_4(%arg0: i32) -> (i32, i32) {
    %c0_i32 = arith.constant 0 : i32
    %c0_i32_0 = arith.constant 0 : i32
    return %arg0, %c0_i32 : i32, i32
  }
  func.func @transform_5(%arg0: i32) -> (i32, i32) {
    %c0_i32 = arith.constant 0 : i32
    %c0_i32_0 = arith.constant 0 : i32
    %c0_i32_1 = arith.constant 0 : i32
    return %c0_i32, %c0_i32_0 : i32, i32
  }
  func.func @transform_6(%arg0: i32) -> (i32, i32) {
    %c0_i32 = arith.constant 0 : i32
    %c0_i32_0 = arith.constant 0 : i32
    return %arg0, %c0_i32 : i32, i32
  }
  func.func @transform_7(%arg0: i32) -> (i32, i32) {
    %c0_i32 = arith.constant 0 : i32
    %c0_i32_0 = arith.constant 0 : i32
    %c0_i32_1 = arith.constant 0 : i32
    return %c0_i32, %c0_i32_0 : i32, i32
  }
  func.func @transform_8(%arg0: i32) -> (i32, i32) {
    %c0_i32 = arith.constant 0 : i32
    %c0_i32_0 = arith.constant 0 : i32
    return %arg0, %c0_i32 : i32, i32
  }
  func.func @transform_9(%arg0: i32) -> (i32, i32) {
    %c0_i32 = arith.constant 0 : i32
    %c0_i32_0 = arith.constant 0 : i32
    return %arg0, %c0_i32 : i32, i32
  }
}

</mosaic_0001>

<bundles_post_ra>
// kernel: tpu_custom_call.1
= control target key start
LH: loop header
LB: loop body
LE: loop exit
PB: predicated region body
PF: predicated region fallthrough
CT: control target
= control target key end

     0   :  { %15 = vsyncpa [#allocation3], 0  ;;  %s942_s0 = inlined_call_operand.vmem [shape: f32[16,128], index: 0, kind: input, shape index: {}]   ;;  %s943_s1 = inlined_call_operand.vmem [shape: f32[16,128], index: 1, kind: input, shape index: {}]   ;;  %s944_s2 = inlined_call_operand.vmem [shape: f32[16,1], index: 2, kind: input, shape index: {}]   ;;  %s945_s3 = inlined_call_operand.vmem [shape: f32[1,16], index: 3, kind: input, shape index: {}]   ;;  %s946_s4 = inlined_call_operand.vmem [shape: s32[16,1], index: 4, kind: input, shape index: {}]   ;;  %s947_s5 = inlined_call_operand.vmem [shape: s32[1,16], index: 5, kind: input, shape index: {}]   ;;  %s948_s6 = inlined_call_operand.vmem [shape: f32[16,128], index: 6, kind: input, shape index: {}]   ;;  %s949_s7 = inlined_call_operand.hbm [shape: f32[16,128], index: 7, kind: input, shape index: {}]   ;;  %s950_s8 = inlined_call_operand.hbm [shape: f32[8,128], index: 8, kind: output, shape index: {0}]   ;;  %s951_s9 = inlined_call_operand.hbm [shape: f32[8,128], index: 9, kind: output, shape index: {1}]  }
   0x1   :  { %16 = vsyncpa [#allocation4], 0 }
   0x2   :  { %17 = vsyncpa [#allocation7], 0  ;;  %s737_s30 = smov [#allocation2]   ;;  %s665_s13 = scalar_lea.hbm %s949_s7, 256 }
   0x3   :  { %s37_s10 = sshll.u32 %s737_s30, 4  ;;  %p666_p0 = scmp.ne.s32.totalorder %s949_s7, %s665_s13  ;;  %s38_s10 = int_to_ptr.vmem [resolvable:$true] %s37_s10 }
   0x4   :  { %p669_p1 = scmp.lt.u32.totalorder %s665_s13, %s949_s7 }
   0x6   :  { %p671_p2 = pnand %p669_p1, %p666_p0 }
   0x8   :  { %674 = shalt.err (!%p671_p2)
}
   0x9   :  { %s675_s18 = scalar_lea.vmem %s38_s10, 256  ;;  %p680_p4 = scmp.lt.s32.totalorder %s38_s10, %s38_s10 }
   0xa   :  { %p676_p3 = scmp.ne.s32.totalorder %s38_s10, %s675_s18  ;;  %p681_p5 = scmp.lt.s32.totalorder %s675_s18, %s675_s18 }
   0xc   :  { %p682_p6 = por %p681_p5, %p680_p4 }
   0xe   :  { %p683_p7 = pnand %p682_p6, %p676_p3 }
  0x10   :  { %686 = shalt.err (!%p683_p7)
}
  0x11   :  { %s738_s19 = smov 128   ;;  %s739_s20 = smov 8  }
  0x12   :  { %43 = dma.hbm_to_vmem [thread:$0]  %s949_s7, 256, %s38_s10, [#allocation3], %s738_s19, %s738_s19, %s739_s20  }
  0x13   :  { %731 = dma.done.wait [#allocation3], 256  }
  0x14   :  { %732 = vsyncadd [#allocation3], 4294967040  ;;  %v740_v0 = vmov 0   ;;  %v49_v1 = vld [vmem:[%s943_s1] sm:$0xff]  ;;  %v50_v2 = vld [vmem:[%s943_s1 + $0x8] sm:$0xff]  ;;  %v160_v14 = vlaneseq  ;;  %vm741_vm1 = vmmov 1  }
  0x15   :  { %647 = vset.pattern.permute.xlu0 %v740_v0  ;;  %648 = vset.pattern.permute.xlu1 %v740_v0  ;;  %v47_v3 = vld [vmem:[%s942_s0] sm:$0xff]  ;;  %v627_v4 = vpack.c.bf16 %v50_v2, %v49_v1  ;;  %v56_v7 = vld [vmem:[%s944_s2 + $0x8] sm:$0xff]  ;;  %vm180_vm5 = vcmask 130048   ;;  %s743_s19 = smov [#allocation5]  }
  0x16   :  { %610 = vmatprep.mubr.f32.mxu0 %v47_v3  ;;  %v55_v5 = vld [vmem:[%s944_s2] sm:$0xff]  ;;  %v59_v8 = vld [vmem:[%s946_s4 + $0x8] sm:$0xff]  ;;  %v838_v19 = vand.u32 127, %v160_v14  ;;  %v163_v3 = vshrl.u32 %v160_v14, 7  ;;  %s561_s20 = sshll.u32 %s743_s19, 4  ;;  %s562_s20 = int_to_ptr.vmem [resolvable:$true] %s561_s20 }
  0x17   :  { %v58_v6 = vld [vmem:[%s946_s4] sm:$0xff]  ;;  %138 = vperm.xlu0 %647, %v55_v5   ;;  %628 = vmatprep.subr.bf16.mxu0 %v627_v4  ;;  %v48_v9 = vld [vmem:[%s942_s0 + $0x8] sm:$0xff]  ;;  %s687_s21 = scalar_lea.vmem %s562_s20, 128  ;;  %p692_p9 = scmp.lt.s32.totalorder %s562_s20, %s562_s20 }
  0x18   :  { %166 = vperm.xlu1 %648, %v58_v6   ;;  %630 = vmatpush3.bf16.xpose.msra.mxu0 %v627_v4  ;;  %v584_v11 = vld [vmem:[%s945_s3] ss:$0 sm:$0xff]  ;;  %vm177_vm3 = vcmp.lt.s32.totalorder %v838_v19, 14  ;;  %p688_p8 = scmp.ne.s32.totalorder %s562_s20, %s687_s21  ;;  %p693_p10 = scmp.lt.s32.totalorder %s687_s21, %s687_s21 }
  0x19   :  { %v585_v15 = vld [vmem:[%s947_s5] ss:$0 sm:$0xff] }
  0x1a   :  { %p694_p11 = por %p693_p10, %p692_p9 }
  0x1b   :  { %143 = vperm.xlu0 %647, %v56_v7  }
  0x1c   :  { %169 = vperm.xlu1 %648, %v59_v8   ;;  %p695_p12 = pnand %p694_p11, %p688_p8 }
  0x1f   :  { %611 = vmatmul.mubr.f32.vlgmr.msra.gmra.mrb[0].mxu0 %v48_v9 }
  0x96   :  { %v139_v10 = vpop.permute.xlu0 %138 }
  0x97   :  { %v167_v12 = vpop.permute.xlu1 %166  ;;  %v152_v17 = vadd.f32 %v584_v11, %v139_v10 }
  0x98   :  { %vm175_vm0 = vcmp.eq.s32.totalorder %v167_v12, %v585_v15  ;;  %v889_v12 = vadd.s32 8, %v163_v3 }
  0x99   :  { %vm221_vm2 = vmxor %vm175_vm0, %vm741_vm1 }
  0x9a   :  { %v144_v13 = vpop.permute.xlu0 %143  ;;  %vm223_vm6 = vmand %vm221_vm2, %vm177_vm3 }
  0x9b   :  { %v153_v16 = vadd.f32 %v584_v11, %v144_v13  ;;  %v170_v23 = vpop.permute.xlu1 %169 }
  0x9c   :  { %vm176_vm4 = vcmp.eq.s32.totalorder %v170_v23, %v585_v15 }
  0x9d   :  { %vm222_vm7 = vmxor %vm176_vm4, %vm741_vm1 }
  0x9e   :  { %vm224_vm8 = vmand %vm222_vm7, %vm177_vm3 }
  0xf2   :  { %v612_v18 = vpop.f32.mrb[0].mxu0 }
  0xf3   :  { %v155_v20 = vmul.f32 2.0, %v612_v18  ;;  %v127_v21 = vpop.f32.mrb[1].mxu0 }
  0xf4   :  { %v154_v22 = vmul.f32 2.0, %v127_v21 }
  0xf5   :  { %v157_v24 = vsub.f32 %v153_v16, %v155_v20 }
  0xf6   :  { %v156_v25 = vsub.f32 %v152_v17, %v154_v22 }
  0xf7   :  { %v159_v26 = vmax.f32 %v157_v24, 1e-12 }
  0xf8   :  { %v158_v27 = vmax.f32 %v156_v25, 1e-12 }
  0xf9   :  { %v179_v28 = vsel %vm176_vm4, %v159_v26, -3e+38  ;;  %v226_v34 = vsel %vm224_vm8, %v159_v26, 3e+38 }
  0xfa   :  { %v184_v29 = vsel %vm180_vm5, %v179_v28, -inf  ;;  %v178_v30 = vsel %vm175_vm0, %v158_v27, -3e+38  ;;  %v225_v32 = vsel %vm223_vm6, %v158_v27, 3e+38  ;;  %v230_v35 = vsel %vm180_vm5, %v226_v34, inf }
  0xfb   :  { %185 = vmax.xlane.f32.xlu1 %v184_v29  ;;  %v181_v31 = vsel %vm180_vm5, %v178_v30, -inf  ;;  %v227_v33 = vsel %vm180_vm5, %v225_v32, inf  ;;  %vm518_vm6 = vcmp.lt.s32.totalorder %v889_v12, 14 }
  0xfc   :  { %182 = vmax.xlane.f32.xlu0 %v181_v31 }
 0x100   :  { %228 = vmin.xlane.f32.xlu0 %v227_v33 }
 0x104   :  { %231 = vmin.xlane.f32.xlu0 %v230_v35 }
 0x188   :  { %v847_v36 = vpop.xlane.xlu1 %185 }
 0x189   :  { %v183_v37 = vpop.xlane.xlu0 %182  ;;  %vm188_vm9 = vcmp.ge.f32.partialorder %v179_v28, %v847_v36  ;;  %vm276_vm0 = vcmp.eq.f32.partialorder %v847_v36, inf  ;;  %v279_v8 = vand.u32 2147483648, %v847_v36  ;;  %vm278_vm3 = vcmp.eq.f32.partialorder %v847_v36, 0.0 }
 0x18a   :  { %649 = vrsqrt.f32 %v183_v37  ;;  %vm187_vm10 = vcmp.ge.f32.partialorder %v178_v30, %v183_v37  ;;  %v190_v38 = vsel %vm188_vm9, %v838_v19, 16  ;;  %vm269_vm13 = vcmp.eq.f32.partialorder %v183_v37, inf }
 0x18b   :  { %651 = vrsqrt.f32 %v847_v36  ;;  %v189_v39 = vsel %vm187_vm10, %v838_v19, 16  ;;  %v854_v41 = vsel %vm180_vm5, %v190_v38, 2147483647  ;;  %v272_v0 = vand.u32 2147483648, %v183_v37 }
 0x18c   :  { %v857_v42 = vsel %vm180_vm5, %v189_v39, 2147483647  ;;  %v208_v43 = vshra.s32 %v854_v41, 16  ;;  %vm271_vm1 = vcmp.eq.f32.partialorder %v183_v37, 0.0  ;;  %v207_v30 = vand.u32 65535, %v854_v41 }
 0x18d   :  { %v229_v40 = vpop.xlane.xlu0 %228  ;;  %v193_v44 = vshra.s32 %v857_v42, 16  ;;  %v192_v31 = vand.u32 65535, %v857_v42 }
 0x18e   :  { %653 = vrsqrt.f32 %v229_v40  ;;  %vm233_vm11 = vcmp.le.f32.partialorder %v225_v32, %v229_v40  ;;  %v862_v46 = vcvt.s32.f32 %v208_v43  ;;  %vm283_vm14 = vcmp.eq.f32.partialorder %v229_v40, inf }
 0x18f   :  { %v235_v45 = vsel %vm233_vm11, %v838_v19, 16  ;;  %v864_v47 = vcvt.s32.f32 %v193_v44  ;;  %v286_v63 = vand.u32 2147483648, %v229_v40  ;;  %vm285_vm15 = vcmp.eq.f32.partialorder %v229_v40, 0.0 }
 0x190   :  { %v867_v49 = vsel %vm180_vm5, %v235_v45, 2147483647  ;;  %211 = vmin.xlane.f32.xlu0 %v862_v46  ;;  %v194_v35 = vcvt.s32.f32 %v192_v31 }
 0x191   :  { %v232_v48 = vpop.xlane.xlu0 %231  ;;  %196 = vmin.xlane.f32.xlu1 %v864_v47  ;;  %v239_v50 = vshra.s32 %v867_v49, 16 }
 0x192   :  { %655 = vrsqrt.f32 %v232_v48  ;;  %vm234_vm12 = vcmp.le.f32.partialorder %v226_v34, %v232_v48  ;;  %vm290_vm2 = vcmp.eq.f32.partialorder %v232_v48, inf  ;;  %v293_v9 = vand.u32 2147483648, %v232_v48 }
 0x193   :  { %v236_v52 = vsel %vm234_vm12, %v838_v19, 16  ;;  %v873_v53 = vcvt.s32.f32 %v239_v50  ;;  %vm292_vm4 = vcmp.eq.f32.partialorder %v232_v48, 0.0  ;;  %v209_v34 = vcvt.s32.f32 %v207_v30 }
 0x194   :  { %v650_v51 = vpop.eup %649  ;;  %v876_v54 = vsel %vm180_vm5, %v236_v52, 2147483647 }
 0x195   :  { %v652_v55 = vpop.eup %651  ;;  %v268_v56 = vmul.f32 %v650_v51, %v183_v37  ;;  %v254_v57 = vshra.s32 %v876_v54, 16  ;;  %242 = vmin.xlane.f32.xlu1 %v873_v53  ;;  %v253_v39 = vand.u32 65535, %v876_v54 }
 0x196   :  { %v275_v60 = vmul.f32 %v652_v55, %v847_v36 }
 0x197   :  { %v880_v59 = vcvt.s32.f32 %v254_v57  ;;  %v270_v62 = vsel %vm269_vm13, %v183_v37, %v268_v56  ;;  %v255_v44 = vcvt.s32.f32 %v253_v39 }
 0x198   :  { %v654_v58 = vpop.eup %653  ;;  %v277_v5 = vsel %vm276_vm0, %v847_v36, %v275_v60  ;;  %v273_v7 = vsel %vm271_vm1, %v272_v0, %v270_v62  ;;  %v238_v36 = vand.u32 65535, %v867_v49  ;;  %v742_v0 = vmov 0.0  }
 0x199   :  { %v282_v61 = vmul.f32 %v654_v58, %v229_v40  ;;  %257 = vmin.xlane.f32.xlu0 %v880_v59  ;;  %v280_v13 = vsel %vm278_vm3, %v279_v8, %v277_v5 }
 0x19a   :  { %v240_v41 = vcvt.s32.f32 %v238_v36 }
 0x19b   :  { %v284_v1 = vsel %vm283_vm14, %v229_v40, %v282_v61 }
 0x19c   :  { %v656_v2 = vpop.eup %655  ;;  %v287_v4 = vsel %vm285_vm15, %v286_v63, %v284_v1 }
 0x19d   :  { %v289_v6 = vmul.f32 %v656_v2, %v232_v48  ;;  %v519_v10 = vsub.f32 %v287_v4, %v273_v7 }
 0x19f   :  { %v291_v11 = vsel %vm290_vm2, %v232_v48, %v289_v6  ;;  %v521_v14 = vsub.f32 0.3, %v519_v10  ;;  %v52_v10 = vld [vmem:[%s948_s6 + $0x8] sm:$0xff] }
 0x1a0   :  { %v294_v15 = vsel %vm292_vm4, %v293_v9, %v291_v11 }
 0x1a1   :  { %v520_v16 = vsub.f32 %v294_v15, %v280_v13  ;;  %v523_v20 = vmax.f32 %v521_v14, 0.0  ;;  %v51_v13 = vld [vmem:[%s948_s6] sm:$0xff] }
 0x1a3   :  { %v522_v17 = vsub.f32 0.3, %v520_v16 }
 0x1a5   :  { %v524_v18 = vmax.f32 %v522_v17, 0.0 }
 0x1a7   :  { %v526_v21 = vsel %vm518_vm6, %v524_v18, 0.0 }
 0x1a8   :  { %v535_v22 = vadd.f32 %v526_v21, %v523_v20 }
 0x1aa   :  { %v536_v23 = vrot.slane %v535_v22, 4 }
 0x1ac   :  { %v537_v24 = vadd.f32 %v536_v23, %v535_v22 }
 0x1ae   :  { %v538_v25 = vrot.slane %v537_v24, 2 }
 0x1b0   :  { %v539_v26 = vadd.f32 %v538_v25, %v537_v24 }
 0x1b2   :  { %v540_v27 = vrot.slane %v539_v26, 1 }
 0x1b4   :  { %v541_v28 = vadd.f32 %v540_v27, %v539_v26 }
 0x1b6   :  { %v542_v29 = vmul.f32 0.071428575, %v541_v28 }
 0x1b8   :  { %552 = vst [vmem:[#allocation5] sm:$0xff] %v542_v29 }
 0x21d   :  { %v212_v32 = vpop.xlane.xlu0 %211 }
 0x21e   :  { %v197_v33 = vpop.xlane.xlu1 %196  ;;  %vm213_vm7 = vcmp.eq.f32.partialorder %v862_v46, %v212_v32  ;;  %v53_v46 = vld [vmem:[#allocation2] sm:$0xff]  ;;  %v218_v49 = vcvt.f32.s32 %v212_v32 }
 0x21f   :  { %vm198_vm8 = vcmp.eq.f32.partialorder %v864_v47, %v197_v33  ;;  %v214_v37 = vsel %vm213_vm7, %v209_v34, inf  ;;  %v54_v47 = vld [vmem:[#allocation2 + $0x8] sm:$0xff]  ;;  %v203_v50 = vcvt.f32.s32 %v197_v33 }
 0x220   :  { %v199_v38 = vsel %vm198_vm8, %v194_v35, inf  ;;  %215 = vmin.xlane.f32.xlu0 %v214_v37  ;;  %v631_v48 = vpack.c.bf16 %v54_v47, %v53_v46  ;;  %v219_v51 = vshll.u32 %v218_v49, 16 }
 0x221   :  { %200 = vmin.xlane.f32.xlu1 %v199_v38 }
 0x222   :  { %v243_v40 = vpop.xlane.xlu1 %242  ;;  %632 = vmatprep.subr.bf16.mxu1 %v631_v48 }
 0x223   :  { %vm244_vm9 = vcmp.eq.f32.partialorder %v873_v53, %v243_v40  ;;  %634 = vmatpush3.bf16.msra.mxu1 %v631_v48  ;;  %v204_v53 = vshll.u32 %v203_v50, 16  ;;  %v249_v55 = vcvt.f32.s32 %v243_v40 }
 0x224   :  { %v245_v42 = vsel %vm244_vm9, %v240_v41, inf  ;;  %636 = vmatprep.subr.bf16.mxu1 %v631_v48 }
 0x225   :  { %246 = vmin.xlane.f32.xlu1 %v245_v42  ;;  %v250_v62 = vshll.u32 %v249_v55, 16 }
 0x226   :  { %v258_v43 = vpop.xlane.xlu0 %257 }
 0x227   :  { %vm259_vm10 = vcmp.eq.f32.partialorder %v880_v59, %v258_v43  ;;  %v264_v59 = vcvt.f32.s32 %v258_v43 }
 0x228   :  { %v260_v45 = vsel %vm259_vm10, %v255_v44, inf }
 0x229   :  { %261 = vmin.xlane.f32.xlu0 %v260_v45  ;;  %v265_v5 = vshll.u32 %v264_v59, 16 }
 0x2ad   :  { %v216_v52 = vpop.xlane.xlu0 %215 }
 0x2ae   :  { %v201_v54 = vpop.xlane.xlu1 %200  ;;  %v217_v56 = vcvt.f32.s32 %v216_v52 }
 0x2af   :  { %v202_v57 = vcvt.f32.s32 %v201_v54 }
 0x2b0   :  { %v220_v58 = vadd.s32 %v219_v51, %v217_v56 }
 0x2b1   :  { %v205_v60 = vadd.s32 %v204_v53, %v202_v57 }
 0x2b2   :  { %v247_v61 = vpop.xlane.xlu1 %246  ;;  %vm296_vm12 = vcmp.eq.s32.totalorder %v838_v19, %v220_v58 }
 0x2b3   :  { %v248_v63 = vcvt.f32.s32 %v247_v61  ;;  %vm295_vm11 = vcmp.eq.s32.totalorder %v838_v19, %v205_v60  ;;  %v587_v3 = vsel %vm296_vm12, 1.0, %v742_v0 }
 0x2b4   :  { %v586_v1 = vsel %vm295_vm11, 1.0, %v742_v0 }
 0x2b5   :  { %v251_v2 = vadd.s32 %v250_v62, %v248_v63  ;;  %617 = vmatprep.mubr.msk.f32.mxu1 %vm180_vm5, %v586_v1 }
 0x2b6   :  { %v262_v4 = vpop.xlane.xlu0 %261  ;;  %618 = vmatmul.mubr.msk.f32.vlgmr.msra.gmra.mrb[0].mxu1 %vm180_vm5, %v587_v3 }
 0x2b7   :  { %v263_v6 = vcvt.f32.s32 %v262_v4  ;;  %638 = vmatpush3.bf16.msra.mxu1 %v631_v48  ;;  %vm301_vm13 = vcmp.eq.s32.totalorder %v838_v19, %v251_v2 }
 0x2b8   :  { %v588_v8 = vsel %vm301_vm13, 1.0, %v742_v0 }
 0x2b9   :  { %v266_v7 = vadd.s32 %v265_v5, %v263_v6  ;;  %624 = vmatprep.mubr.msk.f32.mxu1 %vm180_vm5, %v588_v8 }
 0x2bb   :  { %vm302_vm14 = vcmp.eq.s32.totalorder %v838_v19, %v266_v7 }
 0x2bc   :  { %v589_v9 = vsel %vm302_vm14, 1.0, %v742_v0 }
 0x2bd   :  { %625 = vmatmul.mubr.msk.f32.vlgmr.msra.gmra.mrb[2].mxu1 %vm180_vm5, %v589_v9 }
 0x389   :  { %v619_v11 = vpop.f32.mrb[0].mxu1 }
 0x38a   :  { %v470_v15 = vsub.f32 %v52_v10, %v619_v11  ;;  %v379_v16 = vpop.f32.mrb[1].mxu1 }
 0x38b   :  { %v469_v17 = vsub.f32 %v51_v13, %v379_v16 }
 0x38c   :  { %v474_v14 = vmul.f32 %v470_v15, %v470_v15 }
 0x38d   :  { %v473_v20 = vmul.f32 %v469_v17, %v469_v17 }
 0x38e   :  { %477 = vadd.xlane.f32.xlu1 %v474_v14 }
 0x390   :  { %v626_v18 = vpop.f32.mrb[2].mxu1 }
 0x391   :  { %v472_v19 = vsub.f32 %v52_v10, %v626_v18  ;;  %v460_v21 = vpop.f32.mrb[3].mxu1 }
 0x392   :  { %v471_v23 = vsub.f32 %v51_v13, %v460_v21  ;;  %475 = vadd.xlane.f32.xlu1 %v473_v20 }
 0x393   :  { %v494_v22 = vmul.f32 %v472_v19, %v472_v19 }
 0x394   :  { %v493_v24 = vmul.f32 %v471_v23, %v471_v23 }
 0x395   :  { %497 = vadd.xlane.f32.xlu0 %v494_v22 }
 0x399   :  { %495 = vadd.xlane.f32.xlu0 %v493_v24 }
 0x39a   :  { %698 = shalt.err (!%p695_p12)
}
 0x39b   :  { %s699_s23 = scalar_lea.hbm %s950_s8, 128 }
 0x39c   :  { %p700_p13 = scmp.ne.s32.totalorder %s950_s8, %s699_s23  ;;  %p703_p0 = scmp.lt.u32.totalorder %s699_s23, %s950_s8 }
 0x39e   :  { %p705_p1 = pnand %p703_p0, %p700_p13 }
 0x3a0   :  { %708 = shalt.err (!%p705_p1)
}
 0x3a1   :  { %564 = dma.vmem_to_hbm [thread:$0]  %s562_s20, 128, %s950_s8, [#allocation4]  }
 0x3a2   :  { %s744_s8 = smov [#allocation6]  }
 0x3a3   :  { %s571_s29 = sshll.u32 %s744_s8, 4  ;;  %s572_s29 = int_to_ptr.vmem [resolvable:$true] %s571_s29 }
 0x3a4   :  { %s709_s30 = scalar_lea.vmem %s572_s29, 128  ;;  %p714_p3 = scmp.lt.s32.totalorder %s572_s29, %s572_s29 }
 0x3a5   :  { %p710_p2 = scmp.ne.s32.totalorder %s572_s29, %s709_s30  ;;  %p715_p4 = scmp.lt.s32.totalorder %s709_s30, %s709_s30 }
 0x3a7   :  { %p716_p5 = por %p715_p4, %p714_p3 }
 0x3a9   :  { %p717_p6 = pnand %p716_p5, %p710_p2 }
 0x41b   :  { %v478_v25 = vpop.xlane.xlu1 %477 }
 0x41c   :  { %657 = vrsqrt.f32 %v478_v25  ;;  %vm488_vm5 = vcmp.eq.f32.partialorder %v478_v25, inf  ;;  %v491_v36 = vand.u32 2147483648, %v478_v25  ;;  %vm490_vm0 = vcmp.eq.f32.partialorder %v478_v25, 0.0 }
 0x41f   :  { %v476_v26 = vpop.xlane.xlu1 %475 }
 0x420   :  { %659 = vrsqrt.f32 %v476_v26  ;;  %vm481_vm2 = vcmp.eq.f32.partialorder %v476_v26, inf  ;;  %v484_v45 = vand.u32 2147483648, %v476_v26  ;;  %vm483_vm4 = vcmp.eq.f32.partialorder %v476_v26, 0.0 }
 0x422   :  { %v498_v27 = vpop.xlane.xlu0 %497 }
 0x423   :  { %661 = vrsqrt.f32 %v498_v27  ;;  %vm508_vm15 = vcmp.eq.f32.partialorder %v498_v27, inf  ;;  %v511_v37 = vand.u32 2147483648, %v498_v27  ;;  %vm510_vm1 = vcmp.eq.f32.partialorder %v498_v27, 0.0 }
 0x426   :  { %v496_v28 = vpop.xlane.xlu0 %495  ;;  %v658_v29 = vpop.eup %657 }
 0x427   :  { %663 = vrsqrt.f32 %v496_v28  ;;  %v487_v30 = vmul.f32 %v658_v29, %v478_v25  ;;  %vm501_vm3 = vcmp.eq.f32.partialorder %v496_v28, inf  ;;  %v504_v46 = vand.u32 2147483648, %v496_v28 }
 0x428   :  { %vm503_vm7 = vcmp.eq.f32.partialorder %v496_v28, 0.0 }
 0x429   :  { %v489_v33 = vsel %vm488_vm5, %v478_v25, %v487_v30 }
 0x42a   :  { %v660_v31 = vpop.eup %659  ;;  %v492_v40 = vsel %vm490_vm0, %v491_v36, %v489_v33 }
 0x42b   :  { %v480_v34 = vmul.f32 %v660_v31, %v476_v26 }
 0x42d   :  { %v662_v32 = vpop.eup %661  ;;  %v482_v42 = vsel %vm481_vm2, %v476_v26, %v480_v34 }
 0x42e   :  { %v507_v35 = vmul.f32 %v662_v32, %v498_v27  ;;  %v485_v49 = vsel %vm483_vm4, %v484_v45, %v482_v42 }
 0x430   :  { %v509_v38 = vsel %vm508_vm15, %v498_v27, %v507_v35 }
 0x431   :  { %v664_v39 = vpop.eup %663  ;;  %v512_v41 = vsel %vm510_vm1, %v511_v37, %v509_v38 }
 0x432   :  { %v500_v43 = vmul.f32 %v664_v39, %v496_v28  ;;  %v528_v44 = vsub.f32 %v512_v41, %v492_v40 }
 0x434   :  { %v502_v47 = vsel %vm501_vm3, %v496_v28, %v500_v43  ;;  %v530_v48 = vsub.f32 0.3, %v528_v44 }
 0x435   :  { %v505_v50 = vsel %vm503_vm7, %v504_v46, %v502_v47 }
 0x436   :  { %v527_v51 = vsub.f32 %v505_v50, %v485_v49  ;;  %v532_v52 = vmax.f32 %v530_v48, 0.0 }
 0x438   :  { %v529_v54 = vsub.f32 0.3, %v527_v51  ;;  %v534_v55 = vsel %vm518_vm6, %v532_v52, 0.0 }
 0x43a   :  { %v531_v53 = vmax.f32 %v529_v54, 0.0 }
 0x43c   :  { %v543_v56 = vadd.f32 %v534_v55, %v531_v53 }
 0x43e   :  { %v544_v57 = vrot.slane %v543_v56, 4 }
 0x440   :  { %v545_v58 = vadd.f32 %v544_v57, %v543_v56 }
 0x442   :  { %v546_v60 = vrot.slane %v545_v58, 2 }
 0x444   :  { %v547_v59 = vadd.f32 %v546_v60, %v545_v58 }
 0x446   :  { %v548_v61 = vrot.slane %v547_v59, 1 }
 0x448   :  { %v549_v62 = vadd.f32 %v548_v61, %v547_v59 }
 0x44a   :  { %v550_v63 = vmul.f32 0.071428575, %v549_v62 }
 0x44c   :  { %554 = vst [vmem:[#allocation6] sm:$0xff] %v550_v63 }
 0x44d   :  { %720 = shalt.err (!%p717_p6)
}
 0x44e   :  { %s721_s12 = scalar_lea.hbm %s951_s9, 128 }
 0x44f   :  { %p722_p7 = scmp.ne.s32.totalorder %s951_s9, %s721_s12  ;;  %p725_p8 = scmp.lt.u32.totalorder %s721_s12, %s951_s9 }
 0x451   :  { %p727_p9 = pnand %p725_p8, %p722_p7 }
 0x453   :  { %730 = shalt.err (!%p727_p9)
}
 0x454   :  { %574 = dma.vmem_to_hbm [thread:$0]  %s572_s29, 128, %s951_s9, [#allocation7]  }
 0x455   :  { %733 = dma.done.wait [#allocation4], 128  }
 0x456   :  { %734 = vsyncadd [#allocation4], 4294967168 }
 0x457   :  { %735 = dma.done.wait [#allocation7], 128  }
 0x458   :  { %736 = vsyncadd [#allocation7], 4294967168 }
 0x459   :  { %581 = vsyncpa [#allocation3], 1 }
 0x45a   :  { %582 = vsyncpa [#allocation4], 1 }
 0x45b   :  { %583 = vsyncpa [#allocation7], 1 }

</bundles_post_ra>
